<compile_context>
chip_gen: v5e
topology: v5e:2x2
jax: 0.10.0
libtpu: 0.0.40
codegen_flags: <defaults>
</compile_context>

<pallas_src>
import functools

import jax
import jax.numpy as jnp
from jax import lax
from jax.experimental import pallas as pl
from jax.experimental.pallas import tpu as pltpu

EPS = 1e-5


def projection_head_kernel(x_ref, w1_ref, w2_ref, w3_ref, vec_ref, o_ref, *,
                           hid, out):
    # ---- unpack the fused per-feature vector buffer (static slices) --------
    g1 = vec_ref[:, 0 * hid:1 * hid]
    bt1 = vec_ref[:, 1 * hid:2 * hid]
    g2 = vec_ref[:, 2 * hid:3 * hid]
    bt2 = vec_ref[:, 3 * hid:4 * hid]
    b3 = vec_ref[:, 4 * hid:4 * hid + out]

    # in-kernel bf16 cast (no separate XLA convert op before the call)
    xb = x_ref[...].astype(jnp.bfloat16)

    # ---- Linear 1 (pre-BN bias dropped: cancels under training-mode BN)
    #      + BN(train, folded scale/shift) + ReLU ----------------------------
    h = jnp.dot(xb, w1_ref[...], preferred_element_type=jnp.float32)
    m1 = jnp.mean(h, axis=0, keepdims=True)
    m2 = jnp.mean(h * h, axis=0, keepdims=True)
    var = jnp.maximum(m2 - m1 * m1, 0.0)          # clamp: f32 cancellation -> NaN
    s = g1 * lax.rsqrt(var + EPS)                 # rsqrt on the EUP slot
    t = bt1 - m1 * s
    h = jnp.maximum(h * s + t, 0.0)

    # ---- Linear 2 (bias dropped) + BN(train) + ReLU ------------------------
    h = jnp.dot(h.astype(jnp.bfloat16), w2_ref[...],
                preferred_element_type=jnp.float32)
    m1 = jnp.mean(h, axis=0, keepdims=True)
    m2 = jnp.mean(h * h, axis=0, keepdims=True)
    var = jnp.maximum(m2 - m1 * m1, 0.0)
    s = g2 * lax.rsqrt(var + EPS)
    t = bt2 - m1 * s
    h = jnp.maximum(h * s + t, 0.0)

    # ---- Linear 3 (projection output, keeps its bias) ----------------------
    y = jnp.dot(h.astype(jnp.bfloat16), w3_ref[...],
                preferred_element_type=jnp.float32) + b3
    o_ref[...] = y.astype(o_ref.dtype)


def projection_head(x, params):
    """x: (B, in_features) f32.  Weights stored pre-transposed (in, out), bf16."""
    B, in_f = x.shape
    hid = params["w2"].shape[1]
    out = params["w3"].shape[1]

    # Pack the five per-feature vectors into a single lane-dense buffer.
    vec = jnp.concatenate(
        [params["g1"], params["bt1"], params["g2"], params["bt2"], params["b3"]],
        axis=1).astype(jnp.float32)

    kernel = functools.partial(projection_head_kernel, hid=hid, out=out)

    flops = 2 * B * (in_f * hid + hid * hid + hid * out)
    bytes_accessed = (x.size * x.dtype.itemsize
                      + params["w1"].size * 2
                      + params["w2"].size * 2
                      + params["w3"].size * 2
                      + vec.size * 4
                      + B * out * 4)

    vmem_spec = pl.BlockSpec(memory_space=pltpu.MemorySpace.VMEM)
    return pl.pallas_call(
        kernel,
        out_shape=jax.ShapeDtypeStruct((B, out), jnp.float32),
        in_specs=[vmem_spec] * 5,
        out_specs=vmem_spec,
        cost_estimate=pl.CostEstimate(
            flops=flops, transcendentals=2 * hid,
            bytes_accessed=bytes_accessed),
        # Real working set is < 1 MiB; 8 MiB gives generous headroom and is
        # safe for v7x's 64 MiB VMEM as well as v5e/v6e.
        compiler_params=pltpu.CompilerParams(vmem_limit_bytes=8 * 1024 * 1024),
    )(x, params["w1"], params["w2"], params["w3"], vec)


def init_params(key, in_features, hidden_features, out_features):
    """Deterministic synthetic parameters.

    Linear weights are stored pre-transposed as (in, out) and pre-cast to
    bf16 (MXU-native).  b1/b2 exist only for the reference check; the kernel
    does not need them (they cancel exactly under training-mode BatchNorm).
    """
    ks = jax.random.split(key, 6)
    scale1 = 1.0 / jnp.sqrt(in_features)
    scale2 = 1.0 / jnp.sqrt(hidden_features)
    return {
        "w1": jax.random.uniform(ks[0], (in_features, hidden_features),
                                 jnp.float32, -scale1, scale1).astype(jnp.bfloat16),
        "b1": jax.random.uniform(ks[1], (1, hidden_features),
                                 jnp.float32, -scale1, scale1),
        "g1": jnp.ones((1, hidden_features), jnp.float32),
        "bt1": jnp.zeros((1, hidden_features), jnp.float32),
        "w2": jax.random.uniform(ks[2], (hidden_features, hidden_features),
                                 jnp.float32, -scale2, scale2).astype(jnp.bfloat16),
        "b2": jax.random.uniform(ks[3], (1, hidden_features),
                                 jnp.float32, -scale2, scale2),
        "g2": jnp.ones((1, hidden_features), jnp.float32),
        "bt2": jnp.zeros((1, hidden_features), jnp.float32),
        "w3": jax.random.uniform(ks[4], (hidden_features, out_features),
                                 jnp.float32, -scale2, scale2).astype(jnp.bfloat16),
        "b3": jax.random.uniform(ks[5], (1, out_features),
                                 jnp.float32, -scale2, scale2),
    }


def reference(x, p):
    """Pure-JAX reference mirroring the PyTorch forward (training-mode BN),
    including the pre-BN biases the kernel drops (they cancel exactly)."""
    xb = x.astype(jnp.bfloat16)
    h = jnp.dot(xb, p["w1"], preferred_element_type=jnp.float32) + p["b1"]
    mu, var = jnp.mean(h, 0, keepdims=True), jnp.var(h, 0, keepdims=True)
    h = jnp.maximum((h - mu) / jnp.sqrt(var + EPS) * p["g1"] + p["bt1"], 0.0)
    h = jnp.dot(h.astype(jnp.bfloat16), p["w2"],
                preferred_element_type=jnp.float32) + p["b2"]
    mu, var = jnp.mean(h, 0, keepdims=True), jnp.var(h, 0, keepdims=True)
    h = jnp.maximum((h - mu) / jnp.sqrt(var + EPS) * p["g2"] + p["bt2"], 0.0)
    return jnp.dot(h.astype(jnp.bfloat16), p["w3"],
                   preferred_element_type=jnp.float32) + p["b3"]


if __name__ == "__main__":
    key = jax.random.PRNGKey(0)
    k_x, k_p = jax.random.split(key)

    # Lane/sublane-friendly small shapes: every dim a multiple of (8, 128).
    B, IN_F, HID_F, OUT_F = 128, 128, 128, 256
    x = jax.random.normal(k_x, (B, IN_F), dtype=jnp.float32)
    params = init_params(k_p, IN_F, HID_F, OUT_F)

    y = projection_head(x, params)
    y = jax.block_until_ready(y)

    y_ref = reference(x, params)
    assert y.shape == (B, OUT_F)
    assert jnp.allclose(y, y_ref, atol=2e-3, rtol=2e-3)

    # TODO(synk): BatchNorm1d running_mean/running_var buffer updates (a
    # training-time side effect) are not materialized; forward output matches
    # PyTorch training-mode semantics which use batch statistics.
    print("KERNEL_OK")
</pallas_src>

<mosaic_0001>
module attributes {stable_mosaic.version = 11 : i64} {
  func.func @projection_head_kernel(%arg0: memref<128x128xf32, #tpu.memory_space<vmem>>, %arg1: memref<128x128xbf16, #tpu.memory_space<vmem>>, %arg2: memref<128x128xbf16, #tpu.memory_space<vmem>>, %arg3: memref<128x256xbf16, #tpu.memory_space<vmem>>, %arg4: memref<1x768xf32, #tpu.memory_space<vmem>>, %arg5: memref<128x256xf32, #tpu.memory_space<vmem>>) attributes {dimension_semantics = [], scalar_prefetch = 0 : i64, scratch_operands = 0 : i64, tpu.core_type = #tpu.core_type<tc>} {
    %c0 = arith.constant 0 : index
    %c0_0 = arith.constant 0 : index
    %0 = vector.load %arg4[%c0, %c0_0] : memref<1x768xf32, #tpu.memory_space<vmem>>, vector<1x128xf32>
    %c0_1 = arith.constant 0 : index
    %c128 = arith.constant 128 : index
    %1 = vector.load %arg4[%c0_1, %c128] : memref<1x768xf32, #tpu.memory_space<vmem>>, vector<1x128xf32>
    %c0_2 = arith.constant 0 : index
    %c256 = arith.constant 256 : index
    %2 = vector.load %arg4[%c0_2, %c256] : memref<1x768xf32, #tpu.memory_space<vmem>>, vector<1x128xf32>
    %c0_3 = arith.constant 0 : index
    %c384 = arith.constant 384 : index
    %3 = vector.load %arg4[%c0_3, %c384] : memref<1x768xf32, #tpu.memory_space<vmem>>, vector<1x128xf32>
    %c0_4 = arith.constant 0 : index
    %c512 = arith.constant 512 : index
    %4 = vector.load %arg4[%c0_4, %c512] : memref<1x768xf32, #tpu.memory_space<vmem>>, vector<1x256xf32>
    %c0_5 = arith.constant 0 : index
    %c0_6 = arith.constant 0 : index
    %5 = vector.load %arg0[%c0_5, %c0_6] : memref<128x128xf32, #tpu.memory_space<vmem>>, vector<128x128xf32>
    %6 = arith.truncf %5 : vector<128x128xf32> to vector<128x128xbf16>
    %c0_7 = arith.constant 0 : index
    %c0_8 = arith.constant 0 : index
    %7 = vector.load %arg1[%c0_7, %c0_8] : memref<128x128xbf16, #tpu.memory_space<vmem>>, vector<128x128xbf16>
    %cst = arith.constant dense<0.000000e+00> : vector<128x128xf32>
    %8 = tpu.matmul %6, %7, %cst {dimension_numbers = #tpu.dot_dimension_numbers<[1], [0], [0], [1], [0, 0, 1, 1], [], []>} : vector<128x128xbf16>, vector<128x128xbf16>, vector<128x128xf32> -> vector<128x128xf32>
    %cst_9 = arith.constant dense<0.000000e+00> : vector<128xf32>
    %9 = vector.multi_reduction <add>, %8, %cst_9 [0] : vector<128x128xf32> to vector<128xf32>
    %10 = vector.shape_cast %9 : vector<128xf32> to vector<1x128xf32>
    %cst_10 = arith.constant 1.280000e+02 : f32
    %11 = vector.broadcast %cst_10 : f32 to vector<1x128xf32>
    %12 = arith.divf %10, %11 : vector<1x128xf32>
    %13 = arith.mulf %8, %8 : vector<128x128xf32>
    %cst_11 = arith.constant dense<0.000000e+00> : vector<128xf32>
    %14 = vector.multi_reduction <add>, %13, %cst_11 [0] : vector<128x128xf32> to vector<128xf32>
    %15 = vector.shape_cast %14 : vector<128xf32> to vector<1x128xf32>
    %cst_12 = arith.constant 1.280000e+02 : f32
    %16 = vector.broadcast %cst_12 : f32 to vector<1x128xf32>
    %17 = arith.divf %15, %16 : vector<1x128xf32>
    %18 = arith.mulf %12, %12 : vector<1x128xf32>
    %19 = arith.subf %17, %18 : vector<1x128xf32>
    %cst_13 = arith.constant 0.000000e+00 : f32
    %20 = vector.broadcast %cst_13 : f32 to vector<1x128xf32>
    %21 = arith.maximumf %19, %20 : vector<1x128xf32>
    %cst_14 = arith.constant 9.99999974E-6 : f32
    %22 = vector.broadcast %cst_14 : f32 to vector<1x128xf32>
    %23 = arith.addf %21, %22 : vector<1x128xf32>
    %24 = math.rsqrt %23 : vector<1x128xf32>
    %25 = arith.mulf %0, %24 : vector<1x128xf32>
    %26 = arith.mulf %12, %25 : vector<1x128xf32>
    %27 = arith.subf %1, %26 : vector<1x128xf32>
    %28 = vector.broadcast %25 : vector<1x128xf32> to vector<128x128xf32>
    %29 = arith.mulf %8, %28 : vector<128x128xf32>
    %30 = vector.broadcast %27 : vector<1x128xf32> to vector<128x128xf32>
    %31 = arith.addf %29, %30 : vector<128x128xf32>
    %cst_15 = arith.constant 0.000000e+00 : f32
    %32 = vector.broadcast %cst_15 : f32 to vector<128x128xf32>
    %33 = arith.maximumf %31, %32 : vector<128x128xf32>
    %34 = arith.truncf %33 : vector<128x128xf32> to vector<128x128xbf16>
    %c0_16 = arith.constant 0 : index
    %c0_17 = arith.constant 0 : index
    %35 = vector.load %arg2[%c0_16, %c0_17] : memref<128x128xbf16, #tpu.memory_space<vmem>>, vector<128x128xbf16>
    %cst_18 = arith.constant dense<0.000000e+00> : vector<128x128xf32>
    %36 = tpu.matmul %34, %35, %cst_18 {dimension_numbers = #tpu.dot_dimension_numbers<[1], [0], [0], [1], [0, 0, 1, 1], [], []>} : vector<128x128xbf16>, vector<128x128xbf16>, vector<128x128xf32> -> vector<128x128xf32>
    %cst_19 = arith.constant dense<0.000000e+00> : vector<128xf32>
    %37 = vector.multi_reduction <add>, %36, %cst_19 [0] : vector<128x128xf32> to vector<128xf32>
    %38 = vector.shape_cast %37 : vector<128xf32> to vector<1x128xf32>
    %cst_20 = arith.constant 1.280000e+02 : f32
    %39 = vector.broadcast %cst_20 : f32 to vector<1x128xf32>
    %40 = arith.divf %38, %39 : vector<1x128xf32>
    %41 = arith.mulf %36, %36 : vector<128x128xf32>
    %cst_21 = arith.constant dense<0.000000e+00> : vector<128xf32>
    %42 = vector.multi_reduction <add>, %41, %cst_21 [0] : vector<128x128xf32> to vector<128xf32>
    %43 = vector.shape_cast %42 : vector<128xf32> to vector<1x128xf32>
    %cst_22 = arith.constant 1.280000e+02 : f32
    %44 = vector.broadcast %cst_22 : f32 to vector<1x128xf32>
    %45 = arith.divf %43, %44 : vector<1x128xf32>
    %46 = arith.mulf %40, %40 : vector<1x128xf32>
    %47 = arith.subf %45, %46 : vector<1x128xf32>
    %cst_23 = arith.constant 0.000000e+00 : f32
    %48 = vector.broadcast %cst_23 : f32 to vector<1x128xf32>
    %49 = arith.maximumf %47, %48 : vector<1x128xf32>
    %cst_24 = arith.constant 9.99999974E-6 : f32
    %50 = vector.broadcast %cst_24 : f32 to vector<1x128xf32>
    %51 = arith.addf %49, %50 : vector<1x128xf32>
    %52 = math.rsqrt %51 : vector<1x128xf32>
    %53 = arith.mulf %2, %52 : vector<1x128xf32>
    %54 = arith.mulf %40, %53 : vector<1x128xf32>
    %55 = arith.subf %3, %54 : vector<1x128xf32>
    %56 = vector.broadcast %53 : vector<1x128xf32> to vector<128x128xf32>
    %57 = arith.mulf %36, %56 : vector<128x128xf32>
    %58 = vector.broadcast %55 : vector<1x128xf32> to vector<128x128xf32>
    %59 = arith.addf %57, %58 : vector<128x128xf32>
    %cst_25 = arith.constant 0.000000e+00 : f32
    %60 = vector.broadcast %cst_25 : f32 to vector<128x128xf32>
    %61 = arith.maximumf %59, %60 : vector<128x128xf32>
    %62 = arith.truncf %61 : vector<128x128xf32> to vector<128x128xbf16>
    %c0_26 = arith.constant 0 : index
    %c0_27 = arith.constant 0 : index
    %63 = vector.load %arg3[%c0_26, %c0_27] : memref<128x256xbf16, #tpu.memory_space<vmem>>, vector<128x256xbf16>
    %cst_28 = arith.constant dense<0.000000e+00> : vector<128x256xf32>
    %64 = tpu.matmul %62, %63, %cst_28 {dimension_numbers = #tpu.dot_dimension_numbers<[1], [0], [0], [1], [0, 0, 1, 1], [], []>} : vector<128x128xbf16>, vector<128x256xbf16>, vector<128x256xf32> -> vector<128x256xf32>
    %65 = vector.broadcast %4 : vector<1x256xf32> to vector<128x256xf32>
    %66 = arith.addf %64, %65 : vector<128x256xf32>
    %c0_29 = arith.constant 0 : index
    %c0_30 = arith.constant 0 : index
    %67 = vector.load %arg5[%c0_29, %c0_30] : memref<128x256xf32, #tpu.memory_space<vmem>>, vector<128x256xf32>
    tpu.vector_store %arg5[%c0_29, %c0_30], %66 {strides = array<i32>} : memref<128x256xf32, #tpu.memory_space<vmem>>, vector<128x256xf32>,
    return
  }
}

</mosaic_0001>

<bundles_post_ra>
// kernel: tpu_custom_call.1
= control target key start
LH: loop header
LB: loop body
LE: loop exit
PB: predicated region body
PF: predicated region fallthrough
CT: control target
= control target key end

     0   :  { %10 = vsyncpa [#allocation3], 0  ;;  %s1509_s0 = inlined_call_operand.hbm [shape: f32[128,128], index: 0, kind: input, shape index: {}]   ;;  %s1510_s1 = inlined_call_operand.hbm [shape: bf16[128,128], index: 1, kind: input, shape index: {}]   ;;  %s1511_s2 = inlined_call_operand.hbm [shape: bf16[128,128], index: 2, kind: input, shape index: {}]   ;;  %s1512_s3 = inlined_call_operand.hbm [shape: bf16[128,256], index: 3, kind: input, shape index: {}]   ;;  %s1513_s4 = inlined_call_operand.hbm [shape: f32[1,768], index: 4, kind: input, shape index: {}]   ;;  %s1514_s5 = inlined_call_operand.hbm [shape: f32[128,256], index: 5, kind: output, shape index: {}]  }
   0x1   :  { %11 = vsyncpa [#allocation6], 0 }
   0x2   :  { %12 = vsyncpa [#allocation9], 0  ;;  %s31_s20 = sshll.u32 %s1510_s1, 4  ;;  %s32_s20 = int_to_ptr.hbm [resolvable:$true] %s31_s20 }
   0x3   :  { %13 = vsyncpa [#allocation4], 0  ;;  %s1220_s21 = smov [#allocation5]   ;;  %s1221_s23 = smov 64  }
   0x4   :  { %s33_s22 = sshll.u32 %s1220_s21, 4  ;;  %s1222_s24 = smov 4   ;;  %s34_s22 = int_to_ptr.vmem [resolvable:$true] %s33_s22 }
   0x5   :  { %39 = dma.hbm_to_vmem [thread:$0]  %s32_s20, 1024, %s34_s22, [#allocation6], %s1221_s23, %s1221_s23, %s1222_s24  }
   0x6   :  { %s57_s27 = sshll.u32 %s1512_s3, 4  ;;  %s1223_s28 = smov [#allocation8]   ;;  %s58_s27 = int_to_ptr.hbm [resolvable:$true] %s57_s27 }
   0x7   :  { %s59_s29 = sshll.u32 %s1223_s28, 4  ;;  %s18_s7 = sshll.u32 %s1509_s0, 4  ;;  %s60_s29 = int_to_ptr.vmem [resolvable:$true] %s59_s29  ;;  %s19_s7 = int_to_ptr.hbm [resolvable:$true] %s18_s7 }
   0x8   :  { %s1224_s1 = smov 128   ;;  %s1225_s8 = smov 8  }
   0x9   :  { %65 = dma.hbm_to_vmem [thread:$0]  %s58_s27, 2048, %s60_s29, [#allocation9], %s1224_s1, %s1224_s1, %s1225_s8  }
   0xa   :  { %s44_s11 = sshll.u32 %s1511_s2, 4  ;;  %s1226_s12 = smov [#allocation2]   ;;  %s45_s11 = int_to_ptr.hbm [resolvable:$true] %s44_s11 }
   0xb   :  { %s20_s13 = sshll.u32 %s1226_s12, 4  ;;  %s1227_s3 = smov [#allocation7]   ;;  %s21_s13 = int_to_ptr.vmem [resolvable:$true] %s20_s13 }
   0xc   :  { %26 = dma.hbm_to_vmem [thread:$0]  %s19_s7, 2048, %s21_s13, [#allocation3], %s1224_s1, %s1224_s1, %s1225_s8  }
   0xd   :  { %s46_s14 = sshll.u32 %s1227_s3, 4  ;;  %s71_s0 = sshll.u32 %s1513_s4, 4  ;;  %s47_s14 = int_to_ptr.vmem [resolvable:$true] %s46_s14  ;;  %s72_s0 = int_to_ptr.hbm [resolvable:$true] %s71_s0 }
   0xe   :  { %52 = dma.hbm_to_vmem [thread:$0]  %s45_s11, 1024, %s47_s14, [#allocation6], %s1221_s23, %s1221_s23, %s1222_s24  }
   0xf   :  { %s1228_s17 = smov [#allocation10]  }
  0x10   :  { %s73_s18 = sshll.u32 %s1228_s17, 4  ;;  %s74_s18 = int_to_ptr.vmem [resolvable:$true] %s73_s18 }
  0x11   :  { %76 = dma.hbm_to_vmem [thread:$0]  %s72_s0, 96, %s74_s18, [#allocation9]  }
  0x12   :  { %1212 = dma.done.wait [#allocation3], 2048  }
  0x13   :  { %1213 = vsyncadd [#allocation3], 4294965248 }
  0x14   :  { %1214 = dma.done.wait [#allocation6], 2048  }
  0x15   :  { %1215 = vsyncadd [#allocation6], 4294965248 }
  0x16   :  { %1216 = dma.done.wait [#allocation9], 2144  }
  0x17   :  { %1217 = vsyncadd [#allocation9], 4294965152  ;;  %v1024_v0 = vld [vmem:[#allocation5 + $0x38] sm:$0xff]  ;;  %v1023_v1 = vld [vmem:[#allocation5 + $0x30] sm:$0xff]  ;;  %s1230_s2 = smov [#allocation11]   ;;  %s874_s21 = sshll.u32 %s1514_s5, 4  ;;  %s875_s21 = int_to_ptr.hbm [resolvable:$true] %s874_s21 }
  0x18   :  { %190 = vmatpush.bf16.msra.mxu0 %v1024_v0  ;;  %v1022_v2 = vld [vmem:[#allocation5 + $0x28] sm:$0xff]  ;;  %v1021_v3 = vld [vmem:[#allocation5 + $0x20] sm:$0xff]  ;;  %v1020_v4 = vld [vmem:[#allocation5 + $0x18] sm:$0xff]  ;;  %s872_s4 = sshll.u32 %s1230_s2, 4  ;;  %s1231_s22 = smov 256   ;;  %s873_s4 = int_to_ptr.vmem [resolvable:$true] %s872_s4 }
  0x19   :  { %v1019_v5 = vld [vmem:[#allocation5 + $0x10] sm:$0xff]  ;;  %v1018_v6 = vld [vmem:[#allocation5 + $0x8] sm:$0xff]  ;;  %v1017_v7 = vld [vmem:[#allocation5] sm:$0xff]  ;;  %s1232_s23 = smov 16  }
  0x1a   :  { %v102_v8 = vld [vmem:[#allocation2] sm:$0xff]  ;;  %v103_v9 = vld [vmem:[#allocation2 + $0x8] sm:$0xff]  ;;  %v104_v11 = vld [vmem:[#allocation2 + $0x10] sm:$0xff] }
  0x1b   :  { %v118_v10 = vpack.c.bf16 %v103_v9, %v102_v8  ;;  %v105_v12 = vld [vmem:[#allocation2 + $0x18] sm:$0xff]  ;;  %v106_v14 = vld [vmem:[#allocation2 + $0x20] sm:$0xff]  ;;  %v107_v15 = vld [vmem:[#allocation2 + $0x28] sm:$0xff] }
  0x1c   :  { %191 = vmatpush.bf16.msra.mxu0 %v1023_v1  ;;  %v119_v13 = vpack.c.bf16 %v105_v12, %v104_v11  ;;  %v120_v16 = vpack.c.bf16 %v107_v15, %v106_v14  ;;  %v108_v17 = vld [vmem:[#allocation2 + $0x30] sm:$0xff]  ;;  %v109_v18 = vld [vmem:[#allocation2 + $0x38] sm:$0xff]  ;;  %v110_v20 = vld [vmem:[#allocation2 + $0x40] sm:$0xff] }
  0x1d   :  { %v121_v19 = vpack.c.bf16 %v109_v18, %v108_v17  ;;  %v111_v21 = vld [vmem:[#allocation2 + $0x48] sm:$0xff]  ;;  %v112_v23 = vld [vmem:[#allocation2 + $0x50] sm:$0xff]  ;;  %v113_v24 = vld [vmem:[#allocation2 + $0x58] sm:$0xff] }
  0x1e   :  { %v122_v22 = vpack.c.bf16 %v111_v21, %v110_v20  ;;  %v123_v25 = vpack.c.bf16 %v113_v24, %v112_v23  ;;  %v114_v26 = vld [vmem:[#allocation2 + $0x60] sm:$0xff]  ;;  %v115_v27 = vld [vmem:[#allocation2 + $0x68] sm:$0xff]  ;;  %v116_v29 = vld [vmem:[#allocation2 + $0x70] sm:$0xff] }
  0x1f   :  { %v124_v28 = vpack.c.bf16 %v115_v27, %v114_v26  ;;  %v117_v30 = vld [vmem:[#allocation2 + $0x78] sm:$0xff]  ;;  %v1031_v24 = vld [vmem:[#allocation7 + $0x30] sm:$0xff] }
  0x20   :  { %192 = vmatpush.bf16.msra.mxu0 %v1022_v2  ;;  %v125_v31 = vpack.c.bf16 %v117_v30, %v116_v29  ;;  %v1032_v15 = vld [vmem:[#allocation7 + $0x38] sm:$0xff] }
  0x21   :  { %449 = vmatpush.bf16.msra.mxu1 %v1032_v15 }
  0x24   :  { %193 = vmatpush.bf16.msra.mxu0 %v1021_v3 }
  0x25   :  { %450 = vmatpush.bf16.msra.mxu1 %v1031_v24 }
  0x28   :  { %194 = vmatpush.bf16.msra.mxu0 %v1020_v4 }
  0x2c   :  { %195 = vmatpush.bf16.msra.mxu0 %v1019_v5 }
  0x30   :  { %196 = vmatpush.bf16.msra.mxu0 %v1018_v6 }
  0x34   :  { %197 = vmatpush.bf16.msra.mxu0 %v1017_v7  ;;  %v1229_v7 = vmov 128.0  }
  0x35   :  { %1062 = vrcp.f32 %v1229_v7 }
  0x37   :  { %198 = vmatmul.bf16.vlgmr.msra.gmra.mxu0 %v118_v10 }
  0x47   :  { %203 = vmatmul.bf16.gmra.mxu0 %v119_v13 }
  0x57   :  { %208 = vmatmul.bf16.gmra.mxu0 %v120_v16  ;;  %v1063_v16 = vpop.eup %1062 }
  0x58   :  { %v261_v23 = vmul.f32 128.0, %v1063_v16  ;;  %vm265_vm0 = vweird.f32 %v1063_v16 }
  0x67   :  { %213 = vmatmul.bf16.gmra.mxu0 %v121_v19 }
  0x77   :  { %218 = vmatmul.bf16.gmra.mxu0 %v122_v22 }
  0x87   :  { %223 = vmatmul.bf16.gmra.mxu0 %v123_v25 }
  0x97   :  { %228 = vmatmul.bf16.gmra.mxu0 %v124_v28 }
  0xa7   :  { %233 = vmatmul.bf16.gmra.mxu0 %v125_v31  ;;  %v262_v31 = vsub.f32 1.0, %v261_v23  ;;  %v98_v23 = vld [vmem:[#allocation10 + $0x1] sm:$0x1] }
  0xb4   :  { %v1278_v32 = vpop.f32.mrf.mxu0 }
  0xb5   :  { %v268_v45 = vmul.f32 %v1278_v32, %v1278_v32 }
  0xbc   :  { %v1280_v33 = vpop.f32.mrf.mxu0 }
  0xbd   :  { %v269_v44 = vmul.f32 %v1280_v33, %v1280_v33  ;;  %v239_v46 = vadd.f32 %v1280_v33, %v1278_v32 }
  0xbf   :  { %v284_v48 = vadd.f32 %v269_v44, %v268_v45  ;;  %v1030_v44 = vld [vmem:[#allocation7 + $0x28] sm:$0xff] }
  0xc0   :  { %451 = vmatpush.bf16.msra.mxu1 %v1030_v44 }
  0xc4   :  { %v1282_v34 = vpop.f32.mrf.mxu0 }
  0xc5   :  { %v270_v47 = vmul.f32 %v1282_v34, %v1282_v34  ;;  %v240_v49 = vadd.f32 %v239_v46, %v1282_v34 }
  0xc7   :  { %v285_v52 = vadd.f32 %v284_v48, %v270_v47 }
  0xcc   :  { %v1284_v35 = vpop.f32.mrf.mxu0 }
  0xcd   :  { %v271_v50 = vmul.f32 %v1284_v35, %v1284_v35  ;;  %v241_v53 = vadd.f32 %v240_v49, %v1284_v35 }
  0xcf   :  { %v286_v55 = vadd.f32 %v285_v52, %v271_v50  ;;  %v263_v50 = vmul.f32 %v1063_v16, %v262_v31  ;;  %v1029_v52 = vld [vmem:[#allocation7 + $0x20] sm:$0xff] }
  0xd0   :  { %452 = vmatpush.bf16.msra.mxu1 %v1029_v52 }
  0xd4   :  { %v1286_v36 = vpop.f32.mrf.mxu0 }
  0xd5   :  { %v272_v54 = vmul.f32 %v1286_v36, %v1286_v36  ;;  %v242_v56 = vadd.f32 %v241_v53, %v1286_v36 }
  0xd7   :  { %v287_v58 = vadd.f32 %v286_v55, %v272_v54 }
  0xdc   :  { %v1288_v37 = vpop.f32.mrf.mxu0 }
  0xdd   :  { %v273_v57 = vmul.f32 %v1288_v37, %v1288_v37  ;;  %v243_v59 = vadd.f32 %v242_v56, %v1288_v37 }
  0xdf   :  { %v288_v61 = vadd.f32 %v287_v58, %v273_v57  ;;  %v264_v57 = vadd.f32 %v1063_v16, %v263_v50  ;;  %v1028_v58 = vld [vmem:[#allocation7 + $0x18] sm:$0xff] }
  0xe0   :  { %453 = vmatpush.bf16.msra.mxu1 %v1028_v58 }
  0xe4   :  { %v1290_v38 = vpop.f32.mrf.mxu0 }
  0xe5   :  { %v274_v60 = vmul.f32 %v1290_v38, %v1290_v38  ;;  %v244_v62 = vadd.f32 %v243_v59, %v1290_v38 }
  0xe7   :  { %v289_v1 = vadd.f32 %v288_v61, %v274_v60 }
  0xec   :  { %v1292_v39 = vpop.f32.mrf.mxu0 }
  0xed   :  { %v275_v63 = vmul.f32 %v1292_v39, %v1292_v39  ;;  %v245_v2 = vadd.f32 %v244_v62, %v1292_v39 }
  0xef   :  { %v290_v4 = vadd.f32 %v289_v1, %v275_v63  ;;  %v1353_v63 = vsel %vm265_vm0, %v1063_v16, %v264_v57  ;;  %v1027_v1 = vld [vmem:[#allocation7 + $0x10] sm:$0xff] }
  0xf0   :  { %454 = vmatpush.bf16.msra.mxu1 %v1027_v1 }
  0xf4   :  { %v1294_v40 = vpop.f32.mrf.mxu0 }
  0xf5   :  { %v276_v3 = vmul.f32 %v1294_v40, %v1294_v40  ;;  %v246_v5 = vadd.f32 %v245_v2, %v1294_v40 }
  0xf7   :  { %v291_v8 = vadd.f32 %v290_v4, %v276_v3 }
  0xfc   :  { %v1296_v41 = vpop.f32.mrf.mxu0 }
  0xfd   :  { %v277_v6 = vmul.f32 %v1296_v41, %v1296_v41  ;;  %v247_v9 = vadd.f32 %v246_v5, %v1296_v41 }
  0xff   :  { %v292_v11 = vadd.f32 %v291_v8, %v277_v6  ;;  %v1026_v6 = vld [vmem:[#allocation7 + $0x8] sm:$0xff] }
 0x100   :  { %455 = vmatpush.bf16.msra.mxu1 %v1026_v6 }
 0x104   :  { %v1298_v42 = vpop.f32.mrf.mxu0 }
 0x105   :  { %v278_v10 = vmul.f32 %v1298_v42, %v1298_v42  ;;  %v248_v12 = vadd.f32 %v247_v9, %v1298_v42 }
 0x107   :  { %v293_v17 = vadd.f32 %v292_v11, %v278_v10  ;;  %v1025_v10 = vld [vmem:[#allocation7] sm:$0xff] }
 0x108   :  { %456 = vmatpush.bf16.msra.mxu1 %v1025_v10 }
 0x10c   :  { %v1300_v43 = vpop.f32.mrf.mxu0 }
 0x10d   :  { %v279_v13 = vmul.f32 %v1300_v43, %v1300_v43  ;;  %v249_v18 = vadd.f32 %v248_v12, %v1300_v43 }
 0x10f   :  { %v294_v20 = vadd.f32 %v293_v17, %v279_v13 }
 0x114   :  { %v1313_v51 = vpop.f32.mrf.mxu0 }
 0x115   :  { %v280_v19 = vmul.f32 %v1313_v51, %v1313_v51  ;;  %v250_v21 = vadd.f32 %v249_v18, %v1313_v51 }
 0x117   :  { %v295_v25 = vadd.f32 %v294_v20, %v280_v19  ;;  %v97_v19 = vld [vmem:[#allocation10] sm:$0x1] }
 0x11c   :  { %v1327_v0 = vpop.f32.mrf.mxu0 }
 0x11d   :  { %v281_v22 = vmul.f32 %v1327_v0, %v1327_v0  ;;  %v251_v26 = vadd.f32 %v250_v21, %v1327_v0 }
 0x11f   :  { %v296_v28 = vadd.f32 %v295_v25, %v281_v22 }
 0x124   :  { %v1341_v14 = vpop.f32.mrf.mxu0 }
 0x125   :  { %v282_v27 = vmul.f32 %v1341_v14, %v1341_v14  ;;  %v252_v29 = vadd.f32 %v251_v26, %v1341_v14 }
 0x127   :  { %v297_v45 = vadd.f32 %v296_v28, %v282_v27 }
 0x12c   :  { %v236_v30 = vpop.f32.mrf.mxu0 }
 0x12d   :  { %v253_v46 = vadd.f32 %v252_v29, %v236_v30  ;;  %v283_v47 = vmul.f32 %v236_v30, %v236_v30 }
 0x12f   :  { %v254_v48 = vrot.slane %v253_v46, 4  ;;  %v298_v49 = vadd.f32 %v297_v45, %v283_v47 }
 0x131   :  { %v255_v53 = vadd.f32 %v254_v48, %v253_v46  ;;  %v299_v54 = vrot.slane %v298_v49, 4 }
 0x133   :  { %v256_v55 = vrot.slane %v255_v53, 2  ;;  %v300_v56 = vadd.f32 %v299_v54, %v298_v49 }
 0x135   :  { %v257_v59 = vadd.f32 %v256_v55, %v255_v53  ;;  %v301_v60 = vrot.slane %v300_v56, 2 }
 0x137   :  { %v258_v61 = vrot.slane %v257_v59, 1  ;;  %v302_v62 = vadd.f32 %v301_v60, %v300_v56 }
 0x139   :  { %v259_v2 = vadd.f32 %v258_v61, %v257_v59  ;;  %v303_v3 = vrot.slane %v302_v62, 1 }
 0x13b   :  { %v267_v4 = vmul.f32 %v1353_v63, %v259_v2  ;;  %v304_v5 = vadd.f32 %v303_v3, %v302_v62 }
 0x13d   :  { %v305_v7 = vmul.f32 %v304_v5, %v1353_v63  ;;  %v306_v8 = vmul.f32 %v267_v4, %v267_v4 }
 0x13f   :  { %v307_v9 = vsub.f32 %v305_v7, %v306_v8 }
 0x141   :  { %v308_v11 = vmax.f32 %v307_v9, 0.0 }
 0x143   :  { %v309_v12 = vadd.f32 1e-05, %v308_v11 }
 0x145   :  { %1064 = vrsqrt.f32 %v309_v12  ;;  %vm316_vm2 = vweird.f32 %v309_v12 }
 0x14b   :  { %v1065_v13 = vpop.eup %1064 }
 0x14c   :  { %v311_v15 = vmul.f32 %v1065_v13, %v309_v12  ;;  %vm317_vm1 = vweird.f32 %v1065_v13 }
 0x14d   :  { %vm318_vm3 = vmor %vm316_vm2, %vm317_vm1 }
 0x14e   :  { %v312_v16 = vmul.f32 %v1065_v13, %v311_v15 }
 0x150   :  { %v313_v17 = vmul.f32 0.5, %v312_v16 }
 0x152   :  { %v314_v18 = vsub.f32 1.5, %v313_v17 }
 0x154   :  { %v315_v20 = vmul.f32 %v1065_v13, %v314_v18 }
 0x156   :  { %v319_v21 = vsel %vm318_vm3, %v1065_v13, %v315_v20 }
 0x157   :  { %v320_v22 = vmul.f32 %v319_v21, %v97_v19 }
 0x159   :  { %v321_v24 = vmul.f32 %v320_v22, %v267_v4  ;;  %v324_v25 = vperm.slane %v320_v22, 0 }
 0x15b   :  { %v322_v26 = vsub.f32 %v98_v23, %v321_v24  ;;  %v341_v27 = vmul.f32 %v324_v25, %v236_v30  ;;  %v326_v29 = vmul.f32 %v324_v25, %v1278_v32  ;;  %v327_v31 = vmul.f32 %v324_v25, %v1280_v33 }
 0x15c   :  { %v334_v49 = vmul.f32 %v324_v25, %v1294_v40  ;;  %v335_v50 = vmul.f32 %v324_v25, %v1296_v41  ;;  %v336_v52 = vmul.f32 %v324_v25, %v1298_v42  ;;  %v337_v53 = vmul.f32 %v324_v25, %v1300_v43 }
 0x15d   :  { %v343_v28 = vperm.slane %v322_v26, 0  ;;  %v338_v33 = vmul.f32 %v324_v25, %v1313_v51  ;;  %v339_v59 = vmul.f32 %v324_v25, %v1327_v0  ;;  %v340_v41 = vmul.f32 %v324_v25, %v1341_v14 }
 0x15e   :  { %v328_v4 = vmul.f32 %v324_v25, %v1282_v34  ;;  %v329_v51 = vmul.f32 %v324_v25, %v1284_v35  ;;  %v330_v14 = vmul.f32 %v324_v25, %v1286_v36  ;;  %v331_v13 = vmul.f32 %v324_v25, %v1288_v37 }
 0x15f   :  { %v360_v44 = vadd.f32 %v343_v28, %v341_v27  ;;  %v345_v45 = vadd.f32 %v343_v28, %v326_v29  ;;  %v346_v46 = vadd.f32 %v343_v28, %v327_v31  ;;  %v353_v30 = vadd.f32 %v343_v28, %v334_v49 }
 0x160   :  { %v354_v55 = vadd.f32 %v343_v28, %v335_v50  ;;  %v355_v56 = vadd.f32 %v343_v28, %v336_v52  ;;  %v356_v32 = vadd.f32 %v343_v28, %v337_v53  ;;  %v357_v61 = vadd.f32 %v343_v28, %v338_v33 }
 0x161   :  { %v361_v47 = vmax.f32 %v345_v45, 0.0  ;;  %v362_v48 = vmax.f32 %v346_v46, 0.0  ;;  %v369_v57 = vmax.f32 %v353_v30, 0.0  ;;  %v358_v62 = vadd.f32 %v343_v28, %v339_v59 }
 0x162   :  { %v370_v58 = vmax.f32 %v354_v55, 0.0  ;;  %v371_v60 = vmax.f32 %v355_v56, 0.0  ;;  %v372_v40 = vmax.f32 %v356_v32, 0.0  ;;  %v373_v1 = vmax.f32 %v357_v61, 0.0 }
 0x163   :  { %v377_v54 = vpack.c.bf16 %v362_v48, %v361_v47  ;;  %v359_v2 = vadd.f32 %v343_v28, %v340_v41  ;;  %v376_v3 = vmax.f32 %v360_v44, 0.0  ;;  %v374_v5 = vmax.f32 %v358_v62, 0.0 }
 0x164   :  { %v381_v42 = vpack.c.bf16 %v370_v58, %v369_v57  ;;  %v382_v43 = vpack.c.bf16 %v372_v40, %v371_v60  ;;  %v347_v7 = vadd.f32 %v343_v28, %v328_v4  ;;  %v348_v8 = vadd.f32 %v343_v28, %v329_v51 }
 0x165   :  { %457 = vmatmul.bf16.vlgmr.msra.gmra.mxu1 %v377_v54  ;;  %v375_v6 = vmax.f32 %v359_v2, 0.0  ;;  %v383_v0 = vpack.c.bf16 %v374_v5, %v373_v1  ;;  %v349_v15 = vadd.f32 %v343_v28, %v330_v14  ;;  %v350_v16 = vadd.f32 %v343_v28, %v331_v13 }
 0x166   :  { %v363_v10 = vmax.f32 %v347_v7, 0.0  ;;  %v364_v11 = vmax.f32 %v348_v8, 0.0  ;;  %v332_v35 = vmul.f32 %v324_v25, %v1290_v38  ;;  %v333_v19 = vmul.f32 %v324_v25, %v1292_v39 }
 0x167   :  { %v384_v9 = vpack.c.bf16 %v376_v3, %v375_v6  ;;  %v365_v17 = vmax.f32 %v349_v15, 0.0  ;;  %v366_v34 = vmax.f32 %v350_v16, 0.0 }
 0x168   :  { %v378_v12 = vpack.c.bf16 %v364_v11, %v363_v10  ;;  %v351_v20 = vadd.f32 %v343_v28, %v332_v35  ;;  %v352_v21 = vadd.f32 %v343_v28, %v333_v19 }
 0x169   :  { %v379_v18 = vpack.c.bf16 %v366_v34, %v365_v17 }
 0x16a   :  { %v367_v22 = vmax.f32 %v351_v20, 0.0  ;;  %v368_v23 = vmax.f32 %v352_v21, 0.0 }
 0x16c   :  { %v380_v24 = vpack.c.bf16 %v368_v23, %v367_v22  ;;  %v1011_v23 = vld [vmem:[#allocation8 + $0x70] sm:$0xf] }
 0x175   :  { %462 = vmatmul.bf16.gmra.mxu1 %v378_v12 }
 0x185   :  { %467 = vmatmul.bf16.gmra.mxu1 %v379_v18 }
 0x195   :  { %472 = vmatmul.bf16.gmra.mxu1 %v380_v24  ;;  %v1048_v24 = vld [vmem:[#allocation8 + $0x74] sm:$0xf0] }
 0x1a5   :  { %477 = vmatmul.bf16.gmra.mxu1 %v381_v42 }
 0x1b5   :  { %482 = vmatmul.bf16.gmra.mxu1 %v382_v43 }
 0x1c5   :  { %487 = vmatmul.bf16.gmra.mxu1 %v383_v0 }
 0x1d5   :  { %492 = vmatmul.bf16.gmra.mxu1 %v384_v9 }
 0x1e2   :  { %v1372_v36 = vpop.f32.mrf.mxu1 }
 0x1e3   :  { %v520_v47 = vmul.f32 %v1372_v36, %v1372_v36 }
 0x1ea   :  { %v1374_v37 = vpop.f32.mrf.mxu1 }
 0x1eb   :  { %v521_v46 = vmul.f32 %v1374_v37, %v1374_v37  ;;  %v498_v48 = vadd.f32 %v1374_v37, %v1372_v36 }
 0x1ed   :  { %v536_v50 = vadd.f32 %v521_v46, %v520_v47  ;;  %v1047_v46 = vld [vmem:[#allocation8 + $0x74] sm:$0xf] }
 0x1f2   :  { %v1376_v26 = vpop.f32.mrf.mxu1 }
 0x1f3   :  { %v522_v49 = vmul.f32 %v1376_v26, %v1376_v26  ;;  %v499_v52 = vadd.f32 %v498_v48, %v1376_v26 }
 0x1f5   :  { %v537_v30 = vadd.f32 %v536_v50, %v522_v49  ;;  %v1012_v49 = vor.u32 %v1048_v24, %v1011_v23  ;;  %v1013_v50 = vld [vmem:[#allocation8 + $0x78] sm:$0xf0]  ;;  %v1038_v23 = vld [vmem:[#allocation8 + $0x24] sm:$0xf0] }
 0x1f7   :  { %738 = vmatpush.bf16.msra.mxu2 %v1012_v49 }
 0x1fa   :  { %v1378_v27 = vpop.f32.mrf.mxu1 }
 0x1fb   :  { %v523_v53 = vmul.f32 %v1378_v27, %v1378_v27  ;;  %v500_v55 = vadd.f32 %v499_v52, %v1378_v27  ;;  %v1016_v52 = vor.u32 %v1047_v46, %v1013_v50  ;;  %v1037_v46 = vld [vmem:[#allocation8 + $0x24] sm:$0xf] }
 0x1fd   :  { %v538_v32 = vadd.f32 %v537_v30, %v523_v53  ;;  %787 = vmatpush.bf16.msra.mxu3 %v1016_v52  ;;  %v1036_v52 = vld [vmem:[#allocation8 + $0x14] sm:$0xf0] }
 0x202   :  { %v1380_v38 = vpop.f32.mrf.mxu1 }
 0x203   :  { %v524_v56 = vmul.f32 %v1380_v38, %v1380_v38  ;;  %v501_v33 = vadd.f32 %v500_v55, %v1380_v38  ;;  %v1003_v55 = vld [vmem:[#allocation8 + $0x60] sm:$0xf] }
 0x205   :  { %v539_v58 = vadd.f32 %v538_v32, %v524_v56  ;;  %v1046_v56 = vld [vmem:[#allocation8 + $0x64] sm:$0xf0]  ;;  %v1045_v32 = vld [vmem:[#allocation8 + $0x64] sm:$0xf] }
 0x20a   :  { %v1382_v39 = vpop.f32.mrf.mxu1 }
 0x20b   :  { %v525_v57 = vmul.f32 %v1382_v39, %v1382_v39  ;;  %v502_v59 = vadd.f32 %v501_v33, %v1382_v39 }
 0x20d   :  { %v540_v40 = vadd.f32 %v539_v58, %v525_v57  ;;  %v1004_v58 = vor.u32 %v1046_v56, %v1003_v55  ;;  %v965_v55 = vld [vmem:[#allocation8 + $0x18] sm:$0xf0] }
 0x20f   :  { %739 = vmatpush.bf16.msra.mxu2 %v1004_v58  ;;  %v1033_v58 = vld [vmem:[#allocation8 + $0x4] sm:$0xf] }
 0x212   :  { %v1384_v25 = vpop.f32.mrf.mxu1 }
 0x213   :  { %v526_v60 = vmul.f32 %v1384_v25, %v1384_v25  ;;  %v503_v61 = vadd.f32 %v502_v59, %v1384_v25  ;;  %v1005_v59 = vld [vmem:[#allocation8 + $0x68] sm:$0xf0] }
 0x215   :  { %v541_v62 = vadd.f32 %v540_v40, %v526_v60  ;;  %v1008_v60 = vor.u32 %v1045_v32, %v1005_v59  ;;  %v957_v59 = vld [vmem:[#allocation8 + $0x8] sm:$0xf0] }
 0x217   :  { %788 = vmatpush.bf16.msra.mxu3 %v1008_v60 }
 0x21a   :  { %v1386_v28 = vpop.f32.mrf.mxu1 }
 0x21b   :  { %v527_v41 = vmul.f32 %v1386_v28, %v1386_v28  ;;  %v504_v43 = vadd.f32 %v503_v61, %v1386_v28 }
 0x21d   :  { %v542_v2 = vadd.f32 %v541_v62, %v527_v41  ;;  %v995_v41 = vld [vmem:[#allocation8 + $0x50] sm:$0xf]  ;;  %v1044_v62 = vld [vmem:[#allocation8 + $0x54] sm:$0xf0] }
 0x222   :  { %v1388_v29 = vpop.f32.mrf.mxu1 }
 0x223   :  { %v528_v1 = vmul.f32 %v1388_v29, %v1388_v29  ;;  %v505_v3 = vadd.f32 %v504_v43, %v1388_v29  ;;  %v1043_v43 = vld [vmem:[#allocation8 + $0x54] sm:$0xf] }
 0x225   :  { %v543_v51 = vadd.f32 %v542_v2, %v528_v1 }
 0x22a   :  { %v1390_v31 = vpop.f32.mrf.mxu1 }
 0x22b   :  { %v529_v4 = vmul.f32 %v1390_v31, %v1390_v31  ;;  %v506_v5 = vadd.f32 %v505_v3, %v1390_v31  ;;  %v996_v3 = vor.u32 %v1044_v62, %v995_v41 }
 0x22d   :  { %v544_v7 = vadd.f32 %v543_v51, %v529_v4  ;;  %v997_v4 = vld [vmem:[#allocation8 + $0x58] sm:$0xf0]  ;;  %740 = vmatpush.bf16.msra.mxu2 %v996_v3 }
 0x22e   :  { %v1000_v51 = vor.u32 %v1043_v43, %v997_v4 }
 0x230   :  { %789 = vmatpush.bf16.msra.mxu3 %v1000_v51 }
 0x232   :  { %v1392_v44 = vpop.f32.mrf.mxu1 }
 0x233   :  { %v530_v6 = vmul.f32 %v1392_v44, %v1392_v44  ;;  %v507_v8 = vadd.f32 %v506_v5, %v1392_v44 }
 0x235   :  { %v545_v10 = vadd.f32 %v544_v7, %v530_v6  ;;  %v987_v7 = vld [vmem:[#allocation8 + $0x40] sm:$0xf] }
 0x23a   :  { %v1394_v45 = vpop.f32.mrf.mxu1 }
 0x23b   :  { %v531_v0 = vmul.f32 %v1394_v45, %v1394_v45  ;;  %v508_v11 = vadd.f32 %v507_v8, %v1394_v45  ;;  %v1042_v8 = vld [vmem:[#allocation8 + $0x44] sm:$0xf0] }
 0x23d   :  { %v546_v14 = vadd.f32 %v545_v10, %v531_v0  ;;  %v1041_v0 = vld [vmem:[#allocation8 + $0x44] sm:$0xf] }
 0x242   :  { %v1407_v54 = vpop.f32.mrf.mxu1 }
 0x243   :  { %v532_v12 = vmul.f32 %v1407_v54, %v1407_v54  ;;  %v509_v13 = vadd.f32 %v508_v11, %v1407_v54 }
 0x245   :  { %v547_v16 = vadd.f32 %v546_v14, %v532_v12  ;;  %v988_v12 = vor.u32 %v1042_v8, %v987_v7  ;;  %v989_v14 = vld [vmem:[#allocation8 + $0x48] sm:$0xf0] }
 0x247   :  { %741 = vmatpush.bf16.msra.mxu2 %v988_v12 }
 0x24a   :  { %v1421_v42 = vpop.f32.mrf.mxu1 }
 0x24b   :  { %v533_v15 = vmul.f32 %v1421_v42, %v1421_v42  ;;  %v510_v17 = vadd.f32 %v509_v13, %v1421_v42  ;;  %v992_v13 = vor.u32 %v1041_v0, %v989_v14 }
 0x24d   :  { %v548_v18 = vadd.f32 %v547_v16, %v533_v15  ;;  %790 = vmatpush.bf16.msra.mxu3 %v992_v13 }
 0x252   :  { %v1435_v9 = vpop.f32.mrf.mxu1 }
 0x253   :  { %v534_v34 = vmul.f32 %v1435_v9, %v1435_v9  ;;  %v511_v35 = vadd.f32 %v510_v17, %v1435_v9  ;;  %v979_v17 = vld [vmem:[#allocation8 + $0x30] sm:$0xf] }
 0x255   :  { %v549_v20 = vadd.f32 %v548_v18, %v534_v34  ;;  %v1040_v34 = vld [vmem:[#allocation8 + $0x34] sm:$0xf0]  ;;  %v1039_v18 = vld [vmem:[#allocation8 + $0x34] sm:$0xf] }
 0x25a   :  { %v1447_v19 = vpop.f32.mrf.mxu1 }
 0x25b   :  { %v512_v21 = vadd.f32 %v511_v35, %v1447_v19  ;;  %v535_v22 = vmul.f32 %v1447_v19, %v1447_v19 }
 0x25d   :  { %v513_v47 = vrot.slane %v512_v21, 4  ;;  %v550_v48 = vadd.f32 %v549_v20, %v535_v22  ;;  %v980_v20 = vor.u32 %v1040_v34, %v979_v17  ;;  %v971_v22 = vld [vmem:[#allocation8 + $0x20] sm:$0xf] }
 0x25e   :  { %v972_v49 = vor.u32 %v1038_v23, %v971_v22 }
 0x25f   :  { %v514_v53 = vadd.f32 %v513_v47, %v512_v21  ;;  %v551_v30 = vrot.slane %v550_v48, 4  ;;  %v981_v21 = vld [vmem:[#allocation8 + $0x38] sm:$0xf0]  ;;  %v973_v47 = vld [vmem:[#allocation8 + $0x28] sm:$0xf0]  ;;  %742 = vmatpush.bf16.msra.mxu2 %v980_v20 }
 0x260   :  { %v984_v24 = vor.u32 %v1039_v18, %v981_v21  ;;  %v976_v50 = vor.u32 %v1037_v46, %v973_v47 }
 0x261   :  { %v515_v33 = vrot.slane %v514_v53, 2  ;;  %v552_v57 = vadd.f32 %v551_v30, %v550_v48  ;;  %v1035_v30 = vld [vmem:[#allocation8 + $0x14] sm:$0xf] }
 0x262   :  { %791 = vmatpush.bf16.msra.mxu3 %v984_v24  ;;  %v968_v32 = vor.u32 %v1035_v30, %v965_v55 }
 0x263   :  { %v516_v40 = vadd.f32 %v515_v33, %v514_v53  ;;  %v553_v61 = vrot.slane %v552_v57, 2  ;;  %743 = vmatpush.bf16.msra.mxu2 %v972_v49  ;;  %v955_v33 = vld [vmem:[#allocation8] sm:$0xf] }
 0x265   :  { %v517_v1 = vrot.slane %v516_v40, 1  ;;  %v554_v2 = vadd.f32 %v553_v61, %v552_v57  ;;  %v1034_v57 = vld [vmem:[#allocation8 + $0x4] sm:$0xf0] }
 0x266   :  { %792 = vmatpush.bf16.msra.mxu3 %v976_v50  ;;  %v956_v60 = vor.u32 %v1034_v57, %v955_v33 }
 0x267   :  { %v518_v5 = vadd.f32 %v517_v1, %v516_v40  ;;  %v555_v6 = vrot.slane %v554_v2, 1  ;;  %v960_v40 = vor.u32 %v1033_v58, %v957_v59 }
 0x269   :  { %v519_v10 = vmul.f32 %v518_v5, %v1353_v63  ;;  %v556_v11 = vadd.f32 %v555_v6, %v554_v2  ;;  %v99_v2 = vld [vmem:[#allocation10 + $0x2] sm:$0x1]  ;;  %v100_v5 = vld [vmem:[#allocation10 + $0x3] sm:$0x1] }
 0x26a   :  { %793 = vmatpush.bf16.msra.mxu3 %v968_v32 }
 0x26b   :  { %v557_v15 = vmul.f32 %v556_v11, %v1353_v63  ;;  %v558_v16 = vmul.f32 %v519_v10, %v519_v10  ;;  %v963_v63 = vld [vmem:[#allocation8 + $0x10] sm:$0xf] }
 0x26c   :  { %v964_v56 = vor.u32 %v1036_v52, %v963_v63 }
 0x26d   :  { %v559_v35 = vsub.f32 %v557_v15, %v558_v16 }
 0x26e   :  { %744 = vmatpush.bf16.msra.mxu2 %v964_v56  ;;  %794 = vmatpush.bf16.msra.mxu3 %v960_v40 }
 0x26f   :  { %v560_v48 = vmax.f32 %v559_v35, 0.0 }
 0x271   :  { %v561_v53 = vadd.f32 1e-05, %v560_v48 }
 0x272   :  { %745 = vmatpush.bf16.msra.mxu2 %v956_v60 }
 0x273   :  { %1066 = vrsqrt.f32 %v561_v53  ;;  %vm568_vm5 = vweird.f32 %v561_v53 }
 0x279   :  { %v1067_v61 = vpop.eup %1066 }
 0x27a   :  { %v563_v41 = vmul.f32 %v1067_v61, %v561_v53  ;;  %vm569_vm4 = vweird.f32 %v1067_v61 }
 0x27b   :  { %vm570_vm6 = vmor %vm568_vm5, %vm569_vm4 }
 0x27c   :  { %v564_v62 = vmul.f32 %v1067_v61, %v563_v41 }
 0x27e   :  { %v565_v43 = vmul.f32 0.5, %v564_v62 }
 0x280   :  { %v566_v1 = vsub.f32 1.5, %v565_v43 }
 0x282   :  { %v567_v3 = vmul.f32 %v1067_v61, %v566_v1 }
 0x284   :  { %v571_v4 = vsel %vm570_vm6, %v1067_v61, %v567_v3 }
 0x285   :  { %v572_v51 = vmul.f32 %v571_v4, %v99_v2 }
 0x287   :  { %v573_v6 = vmul.f32 %v572_v51, %v519_v10  ;;  %v576_v7 = vperm.slane %v572_v51, 0 }
 0x289   :  { %v574_v8 = vsub.f32 %v100_v5, %v573_v6  ;;  %v593_v0 = vmul.f32 %v576_v7, %v1447_v19  ;;  %v578_v12 = vmul.f32 %v576_v7, %v1372_v36  ;;  %v579_v14 = vmul.f32 %v576_v7, %v1374_v37 }
 0x28a   :  { %v586_v18 = vmul.f32 %v576_v7, %v1388_v29  ;;  %v587_v35 = vmul.f32 %v576_v7, %v1390_v31  ;;  %v588_v10 = vmul.f32 %v576_v7, %v1392_v44  ;;  %v589_v20 = vmul.f32 %v576_v7, %v1394_v45 }
 0x28b   :  { %v595_v11 = vperm.slane %v574_v8, 0  ;;  %v590_v37 = vmul.f32 %v576_v7, %v1407_v54  ;;  %v591_v47 = vmul.f32 %v576_v7, %v1421_v42  ;;  %v592_v44 = vmul.f32 %v576_v7, %v1435_v9 }
 0x28c   :  { %v580_v30 = vmul.f32 %v576_v7, %v1376_v26  ;;  %v581_v54 = vmul.f32 %v576_v7, %v1378_v27  ;;  %v582_v9 = vmul.f32 %v576_v7, %v1380_v38  ;;  %v583_v40 = vmul.f32 %v576_v7, %v1382_v39  ;;  %v101_v38 = vld [vmem:[#allocation10 + $0x4] sm:$0x3] }
 0x28d   :  { %v612_v13 = vadd.f32 %v595_v11, %v593_v0  ;;  %v597_v15 = vadd.f32 %v595_v11, %v578_v12  ;;  %v598_v16 = vadd.f32 %v595_v11, %v579_v14  ;;  %v605_v19 = vadd.f32 %v595_v11, %v586_v18 }
 0x28e   :  { %v606_v22 = vadd.f32 %v595_v11, %v587_v35  ;;  %v607_v23 = vadd.f32 %v595_v11, %v588_v10  ;;  %v608_v36 = vadd.f32 %v595_v11, %v589_v20  ;;  %v609_v31 = vadd.f32 %v595_v11, %v590_v37 }
 0x28f   :  { %v613_v17 = vmax.f32 %v597_v15, 0.0  ;;  %v614_v34 = vmax.f32 %v598_v16, 0.0  ;;  %v621_v24 = vmax.f32 %v605_v19, 0.0  ;;  %v610_v45 = vadd.f32 %v595_v11, %v591_v47 }
 0x290   :  { %v622_v46 = vmax.f32 %v606_v22, 0.0  ;;  %v623_v29 = vmax.f32 %v607_v23, 0.0  ;;  %v624_v48 = vmax.f32 %v608_v36, 0.0  ;;  %v625_v63 = vmax.f32 %v609_v31, 0.0 }
 0x291   :  { %v629_v21 = vpack.c.bf16 %v614_v34, %v613_v17  ;;  %v611_v52 = vadd.f32 %v595_v11, %v592_v44  ;;  %v628_v53 = vmax.f32 %v612_v13, 0.0  ;;  %v626_v55 = vmax.f32 %v610_v45, 0.0 }
 0x292   :  { %v633_v49 = vpack.c.bf16 %v622_v46, %v621_v24  ;;  %v634_v50 = vpack.c.bf16 %v624_v48, %v623_v29  ;;  %v599_v32 = vadd.f32 %v595_v11, %v580_v30  ;;  %v600_v33 = vadd.f32 %v595_v11, %v581_v54 }
 0x293   :  { %746 = vmatmul.bf16.vlgmr.msra.gmra.mxu2 %v629_v21  ;;  %795 = vmatmul.bf16.vlgmr.msra.gmra.mxu3 %v629_v21  ;;  %v627_v56 = vmax.f32 %v611_v52, 0.0  ;;  %v635_v42 = vpack.c.bf16 %v626_v55, %v625_v63  ;;  %v601_v61 = vadd.f32 %v595_v11, %v582_v9  ;;  %v602_v41 = vadd.f32 %v595_v11, %v583_v40 }
 0x294   :  { %v615_v58 = vmax.f32 %v599_v32, 0.0  ;;  %v616_v59 = vmax.f32 %v600_v33, 0.0  ;;  %v584_v43 = vmul.f32 %v576_v7, %v1384_v25  ;;  %v585_v1 = vmul.f32 %v576_v7, %v1386_v28 }
 0x295   :  { %v636_v57 = vpack.c.bf16 %v628_v53, %v627_v56  ;;  %v617_v26 = vmax.f32 %v601_v61, 0.0  ;;  %v618_v62 = vmax.f32 %v602_v41, 0.0  ;;  %v1470_v39 = vperm.slane %v101_v38, 0 }
 0x296   :  { %v630_v60 = vpack.c.bf16 %v616_v59, %v615_v58  ;;  %v603_v2 = vadd.f32 %v595_v11, %v584_v43  ;;  %v604_v3 = vadd.f32 %v595_v11, %v585_v1  ;;  %v1472_v25 = vperm.slane %v101_v38, 1 }
 0x297   :  { %v631_v27 = vpack.c.bf16 %v618_v62, %v617_v26 }
 0x298   :  { %v619_v4 = vmax.f32 %v603_v2, 0.0  ;;  %v620_v51 = vmax.f32 %v604_v3, 0.0 }
 0x29a   :  { %v632_v5 = vpack.c.bf16 %v620_v51, %v619_v4 }
 0x2a3   :  { %751 = vmatmul.bf16.gmra.mxu2 %v630_v60  ;;  %800 = vmatmul.bf16.gmra.mxu3 %v630_v60 }
 0x2b3   :  { %756 = vmatmul.bf16.gmra.mxu2 %v631_v27  ;;  %805 = vmatmul.bf16.gmra.mxu3 %v631_v27 }
 0x2c3   :  { %761 = vmatmul.bf16.gmra.mxu2 %v632_v5  ;;  %810 = vmatmul.bf16.gmra.mxu3 %v632_v5 }
 0x2d3   :  { %766 = vmatmul.bf16.gmra.mxu2 %v633_v49  ;;  %815 = vmatmul.bf16.gmra.mxu3 %v633_v49 }
 0x2e3   :  { %771 = vmatmul.bf16.gmra.mxu2 %v634_v50  ;;  %820 = vmatmul.bf16.gmra.mxu3 %v634_v50 }
 0x2f3   :  { %776 = vmatmul.bf16.gmra.mxu2 %v635_v42  ;;  %825 = vmatmul.bf16.gmra.mxu3 %v635_v42 }
 0x303   :  { %781 = vmatmul.bf16.gmra.mxu2 %v636_v57  ;;  %830 = vmatmul.bf16.gmra.mxu3 %v636_v57 }
 0x316   :  { %v747_v28 = vpop.f32.mrf.mxu2  ;;  %v796_v6 = vpop.f32.mrf.mxu3 }
 0x317   :  { %v748_v7 = vadd.f32 %v747_v28, %v1470_v39  ;;  %v797_v8 = vadd.f32 %v796_v6, %v1472_v25 }
 0x319   :  { %836 = vst [vmem:[#allocation11] sm:$0xff] %v748_v7 }
 0x31a   :  { %837 = vst [vmem:[#allocation11 + $0x8] sm:$0xff] %v797_v8 }
 0x31e   :  { %v749_v0 = vpop.f32.mrf.mxu2  ;;  %v798_v11 = vpop.f32.mrf.mxu3 }
 0x31f   :  { %v750_v12 = vadd.f32 %v749_v0, %v1470_v39  ;;  %v799_v14 = vadd.f32 %v798_v11, %v1472_v25 }
 0x321   :  { %838 = vst [vmem:[#allocation11 + $0x10] sm:$0xff] %v750_v12 }
 0x322   :  { %839 = vst [vmem:[#allocation11 + $0x18] sm:$0xff] %v799_v14 }
 0x326   :  { %v752_v13 = vpop.f32.mrf.mxu2  ;;  %v801_v15 = vpop.f32.mrf.mxu3 }
 0x327   :  { %v753_v16 = vadd.f32 %v752_v13, %v1470_v39  ;;  %v802_v17 = vadd.f32 %v801_v15, %v1472_v25 }
 0x329   :  { %840 = vst [vmem:[#allocation11 + $0x20] sm:$0xff] %v753_v16 }
 0x32a   :  { %841 = vst [vmem:[#allocation11 + $0x28] sm:$0xff] %v802_v17 }
 0x32e   :  { %v754_v34 = vpop.f32.mrf.mxu2  ;;  %v803_v18 = vpop.f32.mrf.mxu3 }
 0x32f   :  { %v755_v35 = vadd.f32 %v754_v34, %v1470_v39  ;;  %v804_v10 = vadd.f32 %v803_v18, %v1472_v25 }
 0x331   :  { %842 = vst [vmem:[#allocation11 + $0x30] sm:$0xff] %v755_v35 }
 0x332   :  { %843 = vst [vmem:[#allocation11 + $0x38] sm:$0xff] %v804_v10 }
 0x336   :  { %v757_v20 = vpop.f32.mrf.mxu2  ;;  %v806_v21 = vpop.f32.mrf.mxu3 }
 0x337   :  { %v758_v19 = vadd.f32 %v757_v20, %v1470_v39  ;;  %v807_v22 = vadd.f32 %v806_v21, %v1472_v25 }
 0x339   :  { %844 = vst [vmem:[#allocation11 + $0x40] sm:$0xff] %v758_v19 }
 0x33a   :  { %845 = vst [vmem:[#allocation11 + $0x48] sm:$0xff] %v807_v22 }
 0x33e   :  { %v759_v23 = vpop.f32.mrf.mxu2  ;;  %v808_v36 = vpop.f32.mrf.mxu3 }
 0x33f   :  { %v760_v37 = vadd.f32 %v759_v23, %v1470_v39  ;;  %v809_v24 = vadd.f32 %v808_v36, %v1472_v25 }
 0x341   :  { %846 = vst [vmem:[#allocation11 + $0x50] sm:$0xff] %v760_v37 }
 0x342   :  { %847 = vst [vmem:[#allocation11 + $0x58] sm:$0xff] %v809_v24 }
 0x346   :  { %v762_v46 = vpop.f32.mrf.mxu2  ;;  %v811_v47 = vpop.f32.mrf.mxu3 }
 0x347   :  { %v763_v29 = vadd.f32 %v762_v46, %v1470_v39  ;;  %v812_v48 = vadd.f32 %v811_v47, %v1472_v25 }
 0x349   :  { %848 = vst [vmem:[#allocation11 + $0x60] sm:$0xff] %v763_v29 }
 0x34a   :  { %849 = vst [vmem:[#allocation11 + $0x68] sm:$0xff] %v812_v48 }
 0x34e   :  { %v764_v31 = vpop.f32.mrf.mxu2  ;;  %v813_v44 = vpop.f32.mrf.mxu3 }
 0x34f   :  { %v765_v49 = vadd.f32 %v764_v31, %v1470_v39  ;;  %v814_v45 = vadd.f32 %v813_v44, %v1472_v25 }
 0x351   :  { %850 = vst [vmem:[#allocation11 + $0x70] sm:$0xff] %v765_v49 }
 0x352   :  { %851 = vst [vmem:[#allocation11 + $0x78] sm:$0xff] %v814_v45 }
 0x356   :  { %v767_v50 = vpop.f32.mrf.mxu2  ;;  %v816_v63 = vpop.f32.mrf.mxu3 }
 0x357   :  { %v768_v52 = vadd.f32 %v767_v50, %v1470_v39  ;;  %v817_v53 = vadd.f32 %v816_v63, %v1472_v25 }
 0x359   :  { %852 = vst [vmem:[#allocation11 + $0x80] sm:$0xff] %v768_v52 }
 0x35a   :  { %853 = vst [vmem:[#allocation11 + $0x88] sm:$0xff] %v817_v53 }
 0x35e   :  { %v769_v30 = vpop.f32.mrf.mxu2  ;;  %v818_v54 = vpop.f32.mrf.mxu3 }
 0x35f   :  { %v770_v55 = vadd.f32 %v769_v30, %v1470_v39  ;;  %v819_v56 = vadd.f32 %v818_v54, %v1472_v25 }
 0x361   :  { %854 = vst [vmem:[#allocation11 + $0x90] sm:$0xff] %v770_v55 }
 0x362   :  { %855 = vst [vmem:[#allocation11 + $0x98] sm:$0xff] %v819_v56 }
 0x366   :  { %v772_v32 = vpop.f32.mrf.mxu2  ;;  %v821_v33 = vpop.f32.mrf.mxu3 }
 0x367   :  { %v773_v42 = vadd.f32 %v772_v32, %v1470_v39  ;;  %v822_v57 = vadd.f32 %v821_v33, %v1472_v25 }
 0x369   :  { %856 = vst [vmem:[#allocation11 + $0xa0] sm:$0xff] %v773_v42 }
 0x36a   :  { %857 = vst [vmem:[#allocation11 + $0xa8] sm:$0xff] %v822_v57 }
 0x36e   :  { %v774_v58 = vpop.f32.mrf.mxu2  ;;  %v823_v59 = vpop.f32.mrf.mxu3 }
 0x36f   :  { %v775_v60 = vadd.f32 %v774_v58, %v1470_v39  ;;  %v824_v9 = vadd.f32 %v823_v59, %v1472_v25 }
 0x371   :  { %858 = vst [vmem:[#allocation11 + $0xb0] sm:$0xff] %v775_v60 }
 0x372   :  { %859 = vst [vmem:[#allocation11 + $0xb8] sm:$0xff] %v824_v9 }
 0x376   :  { %v777_v40 = vpop.f32.mrf.mxu2  ;;  %v826_v61 = vpop.f32.mrf.mxu3 }
 0x377   :  { %v778_v41 = vadd.f32 %v777_v40, %v1470_v39  ;;  %v827_v26 = vadd.f32 %v826_v61, %v1472_v25 }
 0x379   :  { %860 = vst [vmem:[#allocation11 + $0xc0] sm:$0xff] %v778_v41 }
 0x37a   :  { %861 = vst [vmem:[#allocation11 + $0xc8] sm:$0xff] %v827_v26 }
 0x37e   :  { %v779_v62 = vpop.f32.mrf.mxu2  ;;  %v828_v27 = vpop.f32.mrf.mxu3 }
 0x37f   :  { %v780_v43 = vadd.f32 %v779_v62, %v1470_v39  ;;  %v829_v1 = vadd.f32 %v828_v27, %v1472_v25 }
 0x381   :  { %862 = vst [vmem:[#allocation11 + $0xd0] sm:$0xff] %v780_v43 }
 0x382   :  { %863 = vst [vmem:[#allocation11 + $0xd8] sm:$0xff] %v829_v1 }
 0x386   :  { %v782_v2 = vpop.f32.mrf.mxu2  ;;  %v831_v3 = vpop.f32.mrf.mxu3 }
 0x387   :  { %v783_v4 = vadd.f32 %v782_v2, %v1470_v39  ;;  %v832_v51 = vadd.f32 %v831_v3, %v1472_v25 }
 0x389   :  { %864 = vst [vmem:[#allocation11 + $0xe0] sm:$0xff] %v783_v4 }
 0x38a   :  { %865 = vst [vmem:[#allocation11 + $0xe8] sm:$0xff] %v832_v51 }
 0x38e   :  { %v784_v5 = vpop.f32.mrf.mxu2  ;;  %v833_v38 = vpop.f32.mrf.mxu3 }
 0x38f   :  { %v785_v28 = vadd.f32 %v784_v5, %v1470_v39  ;;  %v834_v6 = vadd.f32 %v833_v38, %v1472_v25 }
 0x391   :  { %866 = vst [vmem:[#allocation11 + $0xf0] sm:$0xff] %v785_v28 }
 0x392   :  { %867 = vst [vmem:[#allocation11 + $0xf8] sm:$0xff] %v834_v6 }
 0x393   :  { %880 = dma.vmem_to_hbm [thread:$0]  %s873_s4, 4096, %s875_s21, [#allocation4], %s1231_s22, %s1231_s22, %s1232_s23  }
 0x394   :  { %1218 = dma.done.wait [#allocation4], 4096  }
 0x395   :  { %1219 = vsyncadd [#allocation4], 4294963200 }
 0x396   :  { %885 = vsyncpa [#allocation3], 1 }
 0x397   :  { %886 = vsyncpa [#allocation6], 1 }
 0x398   :  { %887 = vsyncpa [#allocation9], 1 }
 0x399   :  { %888 = vsyncpa [#allocation4], 1 }

</bundles_post_ra>
